<compile_context>
chip_gen: v5e
topology: v5e:2x2
jax: 0.10.0
libtpu: 0.0.40
codegen_flags: <defaults>
</compile_context>

<pallas_src>
import functools

import jax
import jax.numpy as jnp
from jax.experimental import pallas as pl
from jax.experimental.pallas import tpu as pltpu

NEG_SLOPE = 0.01   # PyTorch nn.LeakyReLU default
LANE = 128         # vreg lane width
SUBLANE = 8        # f32 sublane count


def _leaky_relu(x):
    return jnp.where(x > 0, x, NEG_SLOPE * x)


def _round_up(x, m):
    return ((x + m - 1) // m) * m


def _pad_to(a, shape):
    pads = [(0, t - s) for s, t in zip(a.shape, shape)]
    if all(p == (0, 0) for p in pads):
        return a
    return jnp.pad(a, pads)


def mlp_kernel(x_ref, w1_ref, b1_ref, wh_ref, bh_ref, wf_ref, bf_ref, o_ref, *, n_mlp):
    """Fused MLP forward for one batch tile (all feature dims lane-padded to 128*k).

    x_ref : (TB, in_p)
    w1_ref: (in_p, hid_p)            b1_ref: (1, hid_p)
    wh_ref: (n_mlp, hid_p, hid_p)    bh_ref: (n_mlp, 1, hid_p)
    wf_ref: (hid_p, out_p)           bf_ref: (1, out_p)
    o_ref : (TB, out_p)
    """
    x = x_ref[...]

    # first_linear + LeakyReLU (MXU, f32 accumulation; weights used in stored dtype)
    h = jnp.dot(x, w1_ref[...], preferred_element_type=jnp.float32)
    h = _leaky_relu(h + b1_ref[...].astype(jnp.float32))

    # n_mlp x (Linear(hidden, hidden) + LeakyReLU) — statically unrolled.
    # For large n_mlp*hidden^2 (weights no longer VMEM-resident, esp. v7x's 64 MiB) this
    # should become a per-layer streamed pipeline (pl.ANY + emit_pipeline); unnecessary here.
    for i in range(n_mlp):
        h = jnp.dot(h, wh_ref[i], preferred_element_type=jnp.float32)
        h = _leaky_relu(h + bh_ref[i].astype(jnp.float32))

    # final_linear (act = Identity)
    y = jnp.dot(h, wf_ref[...], preferred_element_type=jnp.float32)
    y = y + bf_ref[...].astype(jnp.float32)

    o_ref[...] = y.astype(o_ref.dtype)


def mlp_forward(x, params, *, n_mlp, tile_b=None):
    """Fused MLP forward via a single Pallas kernel.

    x: (B, in_chn).  params: w1 (in,hid), b1 (1,hid), wh (n_mlp,hid,hid),
    bh (n_mlp,1,hid), wf (hid,out), bf (1,out).  Weights may be f32 or bf16.
    """
    B, in_chn = x.shape
    hidden_chn = params["w1"].shape[1]
    out_chn = params["wf"].shape[1]

    # ---- lane-dense zero-padding of every feature dimension (exact; see kernel doc) ----
    in_p = _round_up(in_chn, LANE)
    hid_p = _round_up(hidden_chn, LANE)
    out_p = _round_up(out_chn, LANE)

    w1 = _pad_to(params["w1"], (in_p, hid_p))
    b1 = _pad_to(params["b1"], (1, hid_p))
    wh = _pad_to(params["wh"], (n_mlp, hid_p, hid_p))
    bh = _pad_to(params["bh"], (n_mlp, 1, hid_p))
    wf = _pad_to(params["wf"], (hid_p, out_p))
    bf = _pad_to(params["bf"], (1, out_p))

    # ---- batch tiling: MXU-height-aligned tiles, >=2 grid steps when the batch allows ----
    if tile_b is None:
        tile_b = 256 if _round_up(B, SUBLANE) > 256 else _round_up(B, SUBLANE)
    assert tile_b % SUBLANE == 0, "tile_b must be a multiple of 8"
    B_pad = _round_up(B, tile_b)
    x_p = _pad_to(x, (B_pad, in_p))
    grid = (B_pad // tile_b,)

    # ---- VMEM budget & cost estimate ----
    nbytes = lambda a: a.size * a.dtype.itemsize
    weight_bytes = sum(nbytes(a) for a in (w1, b1, wh, bh, wf, bf))                 # single-buffered
    io_bytes = 2 * tile_b * (in_p * x_p.dtype.itemsize + out_p * x.dtype.itemsize)  # double-buffered
    act_bytes = 3 * tile_b * hid_p * 4                                              # live f32 activations
    vmem_limit = int(min(max(weight_bytes + io_bytes + act_bytes + (4 << 20), 32 << 20), 100 << 20))

    flops = 2 * B_pad * (in_p * hid_p + n_mlp * hid_p * hid_p + hid_p * out_p)
    cost = pl.CostEstimate(
        flops=flops,
        transcendentals=0,
        bytes_accessed=nbytes(x_p) + weight_bytes + B_pad * out_p * x.dtype.itemsize,
    )

    kernel = functools.partial(mlp_kernel, n_mlp=n_mlp)
    out_shape = jax.ShapeDtypeStruct((B_pad, out_p), x.dtype)

    def build(single_buffer_weights):
        def wspec(shape):
            zeros = (0,) * len(shape)
            kwargs = {}
            if single_buffer_weights:
                # Constant block index across the grid -> one buffer suffices (halves weight VMEM).
                kwargs["pipeline_mode"] = pl.Buffered(1)
            return pl.BlockSpec(shape, lambda i, z=zeros: z, **kwargs)

        return pl.pallas_call(
            kernel,
            out_shape=out_shape,
            grid=grid,
            in_specs=[
                pl.BlockSpec((tile_b, in_p), lambda i: (i, 0)),   # x: tiled over batch
                wspec((in_p, hid_p)),
                wspec((1, hid_p)),
                wspec((n_mlp, hid_p, hid_p)),
                wspec((n_mlp, 1, hid_p)),
                wspec((hid_p, out_p)),
                wspec((1, out_p)),
            ],
            out_specs=pl.BlockSpec((tile_b, out_p), lambda i: (i, 0)),
            compiler_params=pltpu.CompilerParams(
                dimension_semantics=("parallel",),
                vmem_limit_bytes=vmem_limit,
            ),
            cost_estimate=cost,
        )

    args = (x_p, w1, b1, wh, bh, wf, bf)
    try:
        out = build(True)(*args)
    except Exception:
        # Fallback for JAX versions without pipeline_mode / Buffered(1) support.
        out = build(False)(*args)

    return out[:B, :out_chn]


def init_params(key, in_chn, hidden_chn, out_chn, n_mlp, dtype=jnp.float32):
    """Deterministic synthetic parameters (shapes match the PyTorch module, (in,out) layout)."""
    ks = jax.random.split(key, 6)
    s1 = in_chn ** -0.5
    sh = hidden_chn ** -0.5
    u = lambda k, shape, s: jax.random.uniform(k, shape, jnp.float32, -s, s).astype(dtype)
    return {
        "w1": u(ks[0], (in_chn, hidden_chn), s1),
        "b1": u(ks[1], (1, hidden_chn), s1),
        "wh": u(ks[2], (n_mlp, hidden_chn, hidden_chn), sh),
        "bh": u(ks[3], (n_mlp, 1, hidden_chn), sh),
        "wf": u(ks[4], (hidden_chn, out_chn), sh),
        "bf": u(ks[5], (1, out_chn), sh),
    }


def mlp_reference(x, params, *, n_mlp):
    """Pure-JAX reference for correctness checking (f32)."""
    f32 = lambda a: a.astype(jnp.float32)
    h = _leaky_relu(x @ f32(params["w1"]) + f32(params["b1"]))
    for i in range(n_mlp):
        h = _leaky_relu(h @ f32(params["wh"][i]) + f32(params["bh"][i]))
    return h @ f32(params["wf"]) + f32(params["bf"])


if __name__ == "__main__":
    key = jax.random.PRNGKey(0)
    k_x, k_p = jax.random.split(key)

    # Small shapes consistent with the module: batch=8, in=32, hidden=32, out=16, n_mlp=2
    B, IN, HID, OUT, N_MLP = 8, 32, 32, 16, 2

    x = jax.random.normal(k_x, (B, IN), dtype=jnp.float32)
    params = init_params(k_p, IN, HID, OUT, N_MLP)

    out = mlp_forward(x, params, n_mlp=N_MLP)
    out = jax.block_until_ready(out)

    ref = mlp_reference(x, params, n_mlp=N_MLP)
    assert out.shape == (B, OUT)
    assert jnp.allclose(out, ref, atol=1e-5, rtol=1e-5), float(jnp.max(jnp.abs(out - ref)))

    print("KERNEL_OK")
</pallas_src>

<mosaic_0001>
module attributes {stable_mosaic.version = 11 : i64} {
  func.func @mlp_kernel(%arg0: i32, %arg1: memref<8x128xf32, #tpu.memory_space<vmem>>, %arg2: memref<128x128xf32, #tpu.memory_space<vmem>>, %arg3: memref<1x128xf32, #tpu.memory_space<vmem>>, %arg4: memref<2x128x128xf32, #tpu.memory_space<vmem>>, %arg5: memref<2x1x128xf32, #tpu.memory_space<vmem>>, %arg6: memref<128x128xf32, #tpu.memory_space<vmem>>, %arg7: memref<1x128xf32, #tpu.memory_space<vmem>>, %arg8: memref<8x128xf32, #tpu.memory_space<vmem>>) attributes {dimension_semantics = [#tpu.dimension_semantics<parallel>], iteration_bounds = array<i64: 1>, scalar_prefetch = 0 : i64, scratch_operands = 0 : i64, tpu.core_type = #tpu.core_type<tc>, window_params = [{transform_indices = @transform_0, window_bounds = array<i64: 8, 128>}, {pipeline_mode = #tpu.pipeline_mode<synchronous>, transform_indices = @transform_1, window_bounds = array<i64: 128, 128>}, {pipeline_mode = #tpu.pipeline_mode<synchronous>, transform_indices = @transform_2, window_bounds = array<i64: 1, 128>}, {pipeline_mode = #tpu.pipeline_mode<synchronous>, transform_indices = @transform_3, window_bounds = array<i64: 2, 128, 128>}, {pipeline_mode = #tpu.pipeline_mode<synchronous>, transform_indices = @transform_4, window_bounds = array<i64: 2, 1, 128>}, {pipeline_mode = #tpu.pipeline_mode<synchronous>, transform_indices = @transform_5, window_bounds = array<i64: 128, 128>}, {pipeline_mode = #tpu.pipeline_mode<synchronous>, transform_indices = @transform_6, window_bounds = array<i64: 1, 128>}, {transform_indices = @transform_7, window_bounds = array<i64: 8, 128>}]} {
    %c0 = arith.constant 0 : index
    %c0_0 = arith.constant 0 : index
    %0 = vector.load %arg1[%c0, %c0_0] : memref<8x128xf32, #tpu.memory_space<vmem>>, vector<8x128xf32>
    %c0_1 = arith.constant 0 : index
    %c0_2 = arith.constant 0 : index
    %1 = vector.load %arg2[%c0_1, %c0_2] : memref<128x128xf32, #tpu.memory_space<vmem>>, vector<128x128xf32>
    %cst = arith.constant dense<0.000000e+00> : vector<8x128xf32>
    %2 = tpu.matmul %0, %1, %cst {dimension_numbers = #tpu.dot_dimension_numbers<[1], [0], [0], [1], [0, 0, 1, 1], [], []>} : vector<8x128xf32>, vector<128x128xf32>, vector<8x128xf32> -> vector<8x128xf32>
    %c0_3 = arith.constant 0 : index
    %c0_4 = arith.constant 0 : index
    %3 = vector.load %arg3[%c0_3, %c0_4] : memref<1x128xf32, #tpu.memory_space<vmem>>, vector<1x128xf32>
    %4 = vector.broadcast %3 : vector<1x128xf32> to vector<8x128xf32>
    %5 = arith.addf %2, %4 : vector<8x128xf32>
    %cst_5 = arith.constant 0.000000e+00 : f32
    %6 = vector.broadcast %cst_5 : f32 to vector<8x128xf32>
    %7 = arith.cmpf ogt, %5, %6 : vector<8x128xf32>
    %cst_6 = arith.constant 0.00999999977 : f32
    %8 = vector.broadcast %cst_6 : f32 to vector<8x128xf32>
    %9 = arith.mulf %8, %5 : vector<8x128xf32>
    %10 = arith.select %7, %5, %9 : vector<8x128xi1>, vector<8x128xf32>
    %c0_7 = arith.constant 0 : index
    %c0_8 = arith.constant 0 : index
    %c0_9 = arith.constant 0 : index
    %11 = vector.load %arg4[%c0_7, %c0_8, %c0_9] : memref<2x128x128xf32, #tpu.memory_space<vmem>>, vector<1x128x128xf32>
    %12 = vector.shape_cast %11 : vector<1x128x128xf32> to vector<128x128xf32>
    %cst_10 = arith.constant dense<0.000000e+00> : vector<8x128xf32>
    %13 = tpu.matmul %10, %12, %cst_10 {dimension_numbers = #tpu.dot_dimension_numbers<[1], [0], [0], [1], [0, 0, 1, 1], [], []>} : vector<8x128xf32>, vector<128x128xf32>, vector<8x128xf32> -> vector<8x128xf32>
    %c0_11 = arith.constant 0 : index
    %c0_12 = arith.constant 0 : index
    %c0_13 = arith.constant 0 : index
    %14 = vector.load %arg5[%c0_11, %c0_12, %c0_13] : memref<2x1x128xf32, #tpu.memory_space<vmem>>, vector<1x1x128xf32>
    %15 = vector.shape_cast %14 : vector<1x1x128xf32> to vector<1x128xf32>
    %16 = vector.broadcast %15 : vector<1x128xf32> to vector<8x128xf32>
    %17 = arith.addf %13, %16 : vector<8x128xf32>
    %cst_14 = arith.constant 0.000000e+00 : f32
    %18 = vector.broadcast %cst_14 : f32 to vector<8x128xf32>
    %19 = arith.cmpf ogt, %17, %18 : vector<8x128xf32>
    %cst_15 = arith.constant 0.00999999977 : f32
    %20 = vector.broadcast %cst_15 : f32 to vector<8x128xf32>
    %21 = arith.mulf %20, %17 : vector<8x128xf32>
    %22 = arith.select %19, %17, %21 : vector<8x128xi1>, vector<8x128xf32>
    %c1 = arith.constant 1 : index
    %c0_16 = arith.constant 0 : index
    %c0_17 = arith.constant 0 : index
    %23 = vector.load %arg4[%c1, %c0_16, %c0_17] : memref<2x128x128xf32, #tpu.memory_space<vmem>>, vector<1x128x128xf32>
    %24 = vector.shape_cast %23 : vector<1x128x128xf32> to vector<128x128xf32>
    %cst_18 = arith.constant dense<0.000000e+00> : vector<8x128xf32>
    %25 = tpu.matmul %22, %24, %cst_18 {dimension_numbers = #tpu.dot_dimension_numbers<[1], [0], [0], [1], [0, 0, 1, 1], [], []>} : vector<8x128xf32>, vector<128x128xf32>, vector<8x128xf32> -> vector<8x128xf32>
    %c1_19 = arith.constant 1 : index
    %c0_20 = arith.constant 0 : index
    %c0_21 = arith.constant 0 : index
    %26 = vector.load %arg5[%c1_19, %c0_20, %c0_21] : memref<2x1x128xf32, #tpu.memory_space<vmem>>, vector<1x1x128xf32>
    %27 = vector.shape_cast %26 : vector<1x1x128xf32> to vector<1x128xf32>
    %28 = vector.broadcast %27 : vector<1x128xf32> to vector<8x128xf32>
    %29 = arith.addf %25, %28 : vector<8x128xf32>
    %cst_22 = arith.constant 0.000000e+00 : f32
    %30 = vector.broadcast %cst_22 : f32 to vector<8x128xf32>
    %31 = arith.cmpf ogt, %29, %30 : vector<8x128xf32>
    %cst_23 = arith.constant 0.00999999977 : f32
    %32 = vector.broadcast %cst_23 : f32 to vector<8x128xf32>
    %33 = arith.mulf %32, %29 : vector<8x128xf32>
    %34 = arith.select %31, %29, %33 : vector<8x128xi1>, vector<8x128xf32>
    %c0_24 = arith.constant 0 : index
    %c0_25 = arith.constant 0 : index
    %35 = vector.load %arg6[%c0_24, %c0_25] : memref<128x128xf32, #tpu.memory_space<vmem>>, vector<128x128xf32>
    %cst_26 = arith.constant dense<0.000000e+00> : vector<8x128xf32>
    %36 = tpu.matmul %34, %35, %cst_26 {dimension_numbers = #tpu.dot_dimension_numbers<[1], [0], [0], [1], [0, 0, 1, 1], [], []>} : vector<8x128xf32>, vector<128x128xf32>, vector<8x128xf32> -> vector<8x128xf32>
    %c0_27 = arith.constant 0 : index
    %c0_28 = arith.constant 0 : index
    %37 = vector.load %arg7[%c0_27, %c0_28] : memref<1x128xf32, #tpu.memory_space<vmem>>, vector<1x128xf32>
    %38 = vector.broadcast %37 : vector<1x128xf32> to vector<8x128xf32>
    %39 = arith.addf %36, %38 : vector<8x128xf32>
    %c0_29 = arith.constant 0 : index
    %c0_30 = arith.constant 0 : index
    %40 = vector.load %arg8[%c0_29, %c0_30] : memref<8x128xf32, #tpu.memory_space<vmem>>, vector<8x128xf32>
    tpu.vector_store %arg8[%c0_29, %c0_30], %39 {strides = array<i32>} : memref<8x128xf32, #tpu.memory_space<vmem>>, vector<8x128xf32>,
    return
  }
  func.func @transform_0(%arg0: i32) -> (i32, i32) {
    %c0_i32 = arith.constant 0 : i32
    %c0_i32_0 = arith.constant 0 : i32
    return %arg0, %c0_i32 : i32, i32
  }
  func.func @transform_1(%arg0: i32) -> (i32, i32) {
    %c0_i32 = arith.constant 0 : i32
    %c0_i32_0 = arith.constant 0 : i32
    %c0_i32_1 = arith.constant 0 : i32
    return %c0_i32, %c0_i32_0 : i32, i32
  }
  func.func @transform_2(%arg0: i32) -> (i32, i32) {
    %c0_i32 = arith.constant 0 : i32
    %c0_i32_0 = arith.constant 0 : i32
    %c0_i32_1 = arith.constant 0 : i32
    return %c0_i32, %c0_i32_0 : i32, i32
  }
  func.func @transform_3(%arg0: i32) -> (i32, i32, i32) {
    %c0_i32 = arith.constant 0 : i32
    %c0_i32_0 = arith.constant 0 : i32
    %c0_i32_1 = arith.constant 0 : i32
    %c0_i32_2 = arith.constant 0 : i32
    return %c0_i32, %c0_i32_0, %c0_i32_1 : i32, i32, i32
  }
  func.func @transform_4(%arg0: i32) -> (i32, i32, i32) {
    %c0_i32 = arith.constant 0 : i32
    %c0_i32_0 = arith.constant 0 : i32
    %c0_i32_1 = arith.constant 0 : i32
    %c0_i32_2 = arith.constant 0 : i32
    return %c0_i32, %c0_i32_0, %c0_i32_1 : i32, i32, i32
  }
  func.func @transform_5(%arg0: i32) -> (i32, i32) {
    %c0_i32 = arith.constant 0 : i32
    %c0_i32_0 = arith.constant 0 : i32
    %c0_i32_1 = arith.constant 0 : i32
    return %c0_i32, %c0_i32_0 : i32, i32
  }
  func.func @transform_6(%arg0: i32) -> (i32, i32) {
    %c0_i32 = arith.constant 0 : i32
    %c0_i32_0 = arith.constant 0 : i32
    %c0_i32_1 = arith.constant 0 : i32
    return %c0_i32, %c0_i32_0 : i32, i32
  }
  func.func @transform_7(%arg0: i32) -> (i32, i32) {
    %c0_i32 = arith.constant 0 : i32
    %c0_i32_0 = arith.constant 0 : i32
    return %arg0, %c0_i32 : i32, i32
  }
}

module attributes {stable_mosaic.version = 11 : i64} {
  func.func @mlp_kernel(%arg0: i32, %arg1: memref<8x128xf32, #tpu.memory_space<vmem>>, %arg2: memref<128x128xf32, #tpu.memory_space<vmem>>, %arg3: memref<1x128xf32, #tpu.memory_space<vmem>>, %arg4: memref<2x128x128xf32, #tpu.memory_space<vmem>>, %arg5: memref<2x1x128xf32, #tpu.memory_space<vmem>>, %arg6: memref<128x128xf32, #tpu.memory_space<vmem>>, %arg7: memref<1x128xf32, #tpu.memory_space<vmem>>, %arg8: memref<8x128xf32, #tpu.memory_space<vmem>>) attributes {dimension_semantics = [#tpu.dimension_semantics<parallel>], iteration_bounds = array<i64: 1>, scalar_prefetch = 0 : i64, scratch_operands = 0 : i64, tpu.core_type = #tpu.core_type<tc>, window_params = [{transform_indices = @transform_0, window_bounds = array<i64: 8, 128>}, {pipeline_mode = #tpu.pipeline_mode<synchronous>, transform_indices = @transform_1, window_bounds = array<i64: 128, 128>}, {pipeline_mode = #tpu.pipeline_mode<synchronous>, transform_indices = @transform_2, window_bounds = array<i64: 1, 128>}, {pipeline_mode = #tpu.pipeline_mode<synchronous>, transform_indices = @transform_3, window_bounds = array<i64: 2, 128, 128>}, {pipeline_mode = #tpu.pipeline_mode<synchronous>, transform_indices = @transform_4, window_bounds = array<i64: 2, 1, 128>}, {pipeline_mode = #tpu.pipeline_mode<synchronous>, transform_indices = @transform_5, window_bounds = array<i64: 128, 128>}, {pipeline_mode = #tpu.pipeline_mode<synchronous>, transform_indices = @transform_6, window_bounds = array<i64: 1, 128>}, {transform_indices = @transform_7, window_bounds = array<i64: 8, 128>}]} {
    %c0 = arith.constant 0 : index
    %c0_0 = arith.constant 0 : index
    %0 = vector.load %arg1[%c0, %c0_0] : memref<8x128xf32, #tpu.memory_space<vmem>>, vector<8x128xf32>
    %c0_1 = arith.constant 0 : index
    %c0_2 = arith.constant 0 : index
    %1 = vector.load %arg2[%c0_1, %c0_2] : memref<128x128xf32, #tpu.memory_space<vmem>>, vector<128x128xf32>
    %cst = arith.constant dense<0.000000e+00> : vector<8x128xf32>
    %2 = tpu.matmul %0, %1, %cst {dimension_numbers = #tpu.dot_dimension_numbers<[1], [0], [0], [1], [0, 0, 1, 1], [], []>} : vector<8x128xf32>, vector<128x128xf32>, vector<8x128xf32> -> vector<8x128xf32>
    %c0_3 = arith.constant 0 : index
    %c0_4 = arith.constant 0 : index
    %3 = vector.load %arg3[%c0_3, %c0_4] : memref<1x128xf32, #tpu.memory_space<vmem>>, vector<1x128xf32>
    %4 = vector.broadcast %3 : vector<1x128xf32> to vector<8x128xf32>
    %5 = arith.addf %2, %4 : vector<8x128xf32>
    %cst_5 = arith.constant 0.000000e+00 : f32
    %6 = vector.broadcast %cst_5 : f32 to vector<8x128xf32>
    %7 = arith.cmpf ogt, %5, %6 : vector<8x128xf32>
    %cst_6 = arith.constant 0.00999999977 : f32
    %8 = vector.broadcast %cst_6 : f32 to vector<8x128xf32>
    %9 = arith.mulf %8, %5 : vector<8x128xf32>
    %10 = arith.select %7, %5, %9 : vector<8x128xi1>, vector<8x128xf32>
    %c0_7 = arith.constant 0 : index
    %c0_8 = arith.constant 0 : index
    %c0_9 = arith.constant 0 : index
    %11 = vector.load %arg4[%c0_7, %c0_8, %c0_9] : memref<2x128x128xf32, #tpu.memory_space<vmem>>, vector<1x128x128xf32>
    %12 = vector.shape_cast %11 : vector<1x128x128xf32> to vector<128x128xf32>
    %cst_10 = arith.constant dense<0.000000e+00> : vector<8x128xf32>
    %13 = tpu.matmul %10, %12, %cst_10 {dimension_numbers = #tpu.dot_dimension_numbers<[1], [0], [0], [1], [0, 0, 1, 1], [], []>} : vector<8x128xf32>, vector<128x128xf32>, vector<8x128xf32> -> vector<8x128xf32>
    %c0_11 = arith.constant 0 : index
    %c0_12 = arith.constant 0 : index
    %c0_13 = arith.constant 0 : index
    %14 = vector.load %arg5[%c0_11, %c0_12, %c0_13] : memref<2x1x128xf32, #tpu.memory_space<vmem>>, vector<1x1x128xf32>
    %15 = vector.shape_cast %14 : vector<1x1x128xf32> to vector<1x128xf32>
    %16 = vector.broadcast %15 : vector<1x128xf32> to vector<8x128xf32>
    %17 = arith.addf %13, %16 : vector<8x128xf32>
    %cst_14 = arith.constant 0.000000e+00 : f32
    %18 = vector.broadcast %cst_14 : f32 to vector<8x128xf32>
    %19 = arith.cmpf ogt, %17, %18 : vector<8x128xf32>
    %cst_15 = arith.constant 0.00999999977 : f32
    %20 = vector.broadcast %cst_15 : f32 to vector<8x128xf32>
    %21 = arith.mulf %20, %17 : vector<8x128xf32>
    %22 = arith.select %19, %17, %21 : vector<8x128xi1>, vector<8x128xf32>
    %c1 = arith.constant 1 : index
    %c0_16 = arith.constant 0 : index
    %c0_17 = arith.constant 0 : index
    %23 = vector.load %arg4[%c1, %c0_16, %c0_17] : memref<2x128x128xf32, #tpu.memory_space<vmem>>, vector<1x128x128xf32>
    %24 = vector.shape_cast %23 : vector<1x128x128xf32> to vector<128x128xf32>
    %cst_18 = arith.constant dense<0.000000e+00> : vector<8x128xf32>
    %25 = tpu.matmul %22, %24, %cst_18 {dimension_numbers = #tpu.dot_dimension_numbers<[1], [0], [0], [1], [0, 0, 1, 1], [], []>} : vector<8x128xf32>, vector<128x128xf32>, vector<8x128xf32> -> vector<8x128xf32>
    %c1_19 = arith.constant 1 : index
    %c0_20 = arith.constant 0 : index
    %c0_21 = arith.constant 0 : index
    %26 = vector.load %arg5[%c1_19, %c0_20, %c0_21] : memref<2x1x128xf32, #tpu.memory_space<vmem>>, vector<1x1x128xf32>
    %27 = vector.shape_cast %26 : vector<1x1x128xf32> to vector<1x128xf32>
    %28 = vector.broadcast %27 : vector<1x128xf32> to vector<8x128xf32>
    %29 = arith.addf %25, %28 : vector<8x128xf32>
    %cst_22 = arith.constant 0.000000e+00 : f32
    %30 = vector.broadcast %cst_22 : f32 to vector<8x128xf32>
    %31 = arith.cmpf ogt, %29, %30 : vector<8x128xf32>
    %cst_23 = arith.constant 0.00999999977 : f32
    %32 = vector.broadcast %cst_23 : f32 to vector<8x128xf32>
    %33 = arith.mulf %32, %29 : vector<8x128xf32>
    %34 = arith.select %31, %29, %33 : vector<8x128xi1>, vector<8x128xf32>
    %c0_24 = arith.constant 0 : index
    %c0_25 = arith.constant 0 : index
    %35 = vector.load %arg6[%c0_24, %c0_25] : memref<128x128xf32, #tpu.memory_space<vmem>>, vector<128x128xf32>
    %cst_26 = arith.constant dense<0.000000e+00> : vector<8x128xf32>
    %36 = tpu.matmul %34, %35, %cst_26 {dimension_numbers = #tpu.dot_dimension_numbers<[1], [0], [0], [1], [0, 0, 1, 1], [], []>} : vector<8x128xf32>, vector<128x128xf32>, vector<8x128xf32> -> vector<8x128xf32>
    %c0_27 = arith.constant 0 : index
    %c0_28 = arith.constant 0 : index
    %37 = vector.load %arg7[%c0_27, %c0_28] : memref<1x128xf32, #tpu.memory_space<vmem>>, vector<1x128xf32>
    %38 = vector.broadcast %37 : vector<1x128xf32> to vector<8x128xf32>
    %39 = arith.addf %36, %38 : vector<8x128xf32>
    %c0_29 = arith.constant 0 : index
    %c0_30 = arith.constant 0 : index
    %40 = vector.load %arg8[%c0_29, %c0_30] : memref<8x128xf32, #tpu.memory_space<vmem>>, vector<8x128xf32>
    tpu.vector_store %arg8[%c0_29, %c0_30], %39 {strides = array<i32>} : memref<8x128xf32, #tpu.memory_space<vmem>>, vector<8x128xf32>,
    return
  }
  func.func @transform_0(%arg0: i32) -> (i32, i32) {
    %c0_i32 = arith.constant 0 : i32
    %c0_i32_0 = arith.constant 0 : i32
    return %arg0, %c0_i32 : i32, i32
  }
  func.func @transform_1(%arg0: i32) -> (i32, i32) {
    %c0_i32 = arith.constant 0 : i32
    %c0_i32_0 = arith.constant 0 : i32
    %c0_i32_1 = arith.constant 0 : i32
    return %c0_i32, %c0_i32_0 : i32, i32
  }
  func.func @transform_2(%arg0: i32) -> (i32, i32) {
    %c0_i32 = arith.constant 0 : i32
    %c0_i32_0 = arith.constant 0 : i32
    %c0_i32_1 = arith.constant 0 : i32
    return %c0_i32, %c0_i32_0 : i32, i32
  }
  func.func @transform_3(%arg0: i32) -> (i32, i32, i32) {
    %c0_i32 = arith.constant 0 : i32
    %c0_i32_0 = arith.constant 0 : i32
    %c0_i32_1 = arith.constant 0 : i32
    %c0_i32_2 = arith.constant 0 : i32
    return %c0_i32, %c0_i32_0, %c0_i32_1 : i32, i32, i32
  }
  func.func @transform_4(%arg0: i32) -> (i32, i32, i32) {
    %c0_i32 = arith.constant 0 : i32
    %c0_i32_0 = arith.constant 0 : i32
    %c0_i32_1 = arith.constant 0 : i32
    %c0_i32_2 = arith.constant 0 : i32
    return %c0_i32, %c0_i32_0, %c0_i32_1 : i32, i32, i32
  }
  func.func @transform_5(%arg0: i32) -> (i32, i32) {
    %c0_i32 = arith.constant 0 : i32
    %c0_i32_0 = arith.constant 0 : i32
    %c0_i32_1 = arith.constant 0 : i32
    return %c0_i32, %c0_i32_0 : i32, i32
  }
  func.func @transform_6(%arg0: i32) -> (i32, i32) {
    %c0_i32 = arith.constant 0 : i32
    %c0_i32_0 = arith.constant 0 : i32
    %c0_i32_1 = arith.constant 0 : i32
    return %c0_i32, %c0_i32_0 : i32, i32
  }
  func.func @transform_7(%arg0: i32) -> (i32, i32) {
    %c0_i32 = arith.constant 0 : i32
    %c0_i32_0 = arith.constant 0 : i32
    return %arg0, %c0_i32 : i32, i32
  }
}

</mosaic_0001>

<bundles_post_ra>
// kernel: tpu_custom_call.1
= control target key start
LH: loop header
LB: loop body
LE: loop exit
PB: predicated region body
PF: predicated region fallthrough
CT: control target
= control target key end

     0   :  { %12 = vsyncpa [#allocation3], 0  ;;  %s494_s0 = inlined_call_operand.hbm [shape: f32[8,128], index: 0, kind: input, shape index: {}]   ;;  %s495_s1 = inlined_call_operand.hbm [shape: f32[128,128], index: 1, kind: input, shape index: {}]   ;;  %s496_s2 = inlined_call_operand.vmem [shape: f32[1,128], index: 2, kind: input, shape index: {}]   ;;  %s497_s3 = inlined_call_operand.hbm [shape: f32[2,128,128], index: 3, kind: input, shape index: {}]   ;;  %s498_s4 = inlined_call_operand.vmem [shape: f32[2,1,128], index: 4, kind: input, shape index: {}]   ;;  %s499_s5 = inlined_call_operand.hbm [shape: f32[128,128], index: 5, kind: input, shape index: {}]   ;;  %s500_s6 = inlined_call_operand.vmem [shape: f32[1,128], index: 6, kind: input, shape index: {}]   ;;  %s501_s7 = inlined_call_operand.hbm [shape: f32[8,128], index: 7, kind: output, shape index: {}]  }
   0x1   :  { %13 = vsyncpa [#allocation6], 0 }
   0x2   :  { %14 = vsyncpa [#allocation9], 0  ;;  %s31_s26 = sshll.u32 %s495_s1, 4  ;;  %s32_s26 = int_to_ptr.hbm [resolvable:$true] %s31_s26 }
   0x3   :  { %15 = vsyncpa [#allocation4], 0  ;;  %s420_s27 = smov [#allocation5]   ;;  %s21_s8 = sshll.u32 %s494_s0, 4  ;;  %s22_s8 = int_to_ptr.hbm [resolvable:$true] %s21_s8 }
   0x4   :  { %s33_s28 = sshll.u32 %s420_s27, 4  ;;  %s421_s9 = smov 128   ;;  %s34_s28 = int_to_ptr.vmem [resolvable:$true] %s33_s28 }
   0x5   :  { %s422_s10 = smov 8   ;;  %s423_s11 = smov [#allocation2]  }
   0x6   :  { %39 = dma.hbm_to_vmem [thread:$0]  %s32_s26, 2048, %s34_s28, [#allocation6], %s421_s9, %s421_s9, %s422_s10  }
   0x7   :  { %s23_s12 = sshll.u32 %s423_s11, 4  ;;  %s46_s15 = sshll.u32 %s497_s3, 4  ;;  %s24_s12 = int_to_ptr.vmem [resolvable:$true] %s23_s12  ;;  %s47_s15 = int_to_ptr.hbm [resolvable:$true] %s46_s15 }
   0x8   :  { %26 = dma.hbm_to_vmem [thread:$0]  %s22_s8, 128, %s24_s12, [#allocation3]  }
   0x9   :  { %s61_s17 = sshll.u32 %s499_s5, 4  ;;  %s424_s18 = smov [#allocation7]   ;;  %s62_s17 = int_to_ptr.hbm [resolvable:$true] %s61_s17 }
   0xa   :  { %s48_s19 = sshll.u32 %s424_s18, 4  ;;  %s425_s0 = smov [#allocation8]   ;;  %s49_s19 = int_to_ptr.vmem [resolvable:$true] %s48_s19 }
   0xb   :  { %54 = dma.hbm_to_vmem [thread:$0]  %s47_s15, 4096, %s49_s19, [#allocation6], %s421_s9, %s421_s9, %s422_s10  }
   0xc   :  { %s63_s20 = sshll.u32 %s425_s0, 4  ;;  %s64_s20 = int_to_ptr.vmem [resolvable:$true] %s63_s20 }
   0xd   :  { %69 = dma.hbm_to_vmem [thread:$0]  %s62_s17, 2048, %s64_s20, [#allocation9], %s421_s9, %s421_s9, %s422_s10  }
   0xe   :  { %412 = dma.done.wait [#allocation3], 128  }
   0xf   :  { %413 = vsyncadd [#allocation3], 4294967168 }
  0x10   :  { %414 = dma.done.wait [#allocation6], 6144  }
  0x11   :  { %415 = vsyncadd [#allocation6], 4294961152 }
  0x12   :  { %416 = dma.done.wait [#allocation9], 2048  }
  0x13   :  { %417 = vsyncadd [#allocation9], 4294965248  ;;  %v104_v0 = vld [vmem:[#allocation5 + $0x78] sm:$0xff]  ;;  %v103_v1 = vld [vmem:[#allocation5 + $0x70] sm:$0xff]  ;;  %s426_s26 = smov [#allocation10]   ;;  %s268_s30 = sshll.u32 %s501_s7, 4  ;;  %s269_s30 = int_to_ptr.hbm [resolvable:$true] %s268_s30 }
  0x14   :  { %109 = vmatpush.msra.mxu0 %v104_v0  ;;  %v102_v2 = vld [vmem:[#allocation5 + $0x68] sm:$0xff]  ;;  %v101_v3 = vld [vmem:[#allocation5 + $0x60] sm:$0xff]  ;;  %v147_v4 = vld [vmem:[#allocation7 + $0x78] sm:$0xff]  ;;  %s266_s27 = sshll.u32 %s426_s26, 4  ;;  %s267_s27 = int_to_ptr.vmem [resolvable:$true] %s266_s27 }
  0x15   :  { %v100_v5 = vld [vmem:[#allocation5 + $0x58] sm:$0xff]  ;;  %152 = vmatpush.msra.mxu1 %v147_v4  ;;  %v146_v6 = vld [vmem:[#allocation7 + $0x70] sm:$0xff]  ;;  %v145_v7 = vld [vmem:[#allocation7 + $0x68] sm:$0xff] }
  0x16   :  { %110 = vmatpush.msra.mxu0 %v103_v1  ;;  %v99_v8 = vld [vmem:[#allocation5 + $0x50] sm:$0xff]  ;;  %v144_v9 = vld [vmem:[#allocation7 + $0x60] sm:$0xff]  ;;  %v98_v10 = vld [vmem:[#allocation5 + $0x48] sm:$0xff] }
  0x17   :  { %153 = vmatpush.msra.mxu1 %v146_v6  ;;  %v143_v11 = vld [vmem:[#allocation7 + $0x58] sm:$0xff]  ;;  %v97_v12 = vld [vmem:[#allocation5 + $0x40] sm:$0xff]  ;;  %v142_v13 = vld [vmem:[#allocation7 + $0x50] sm:$0xff] }
  0x18   :  { %111 = vmatpush.msra.mxu0 %v102_v2  ;;  %v96_v14 = vld [vmem:[#allocation5 + $0x38] sm:$0xff]  ;;  %v141_v15 = vld [vmem:[#allocation7 + $0x48] sm:$0xff]  ;;  %v95_v16 = vld [vmem:[#allocation5 + $0x30] sm:$0xff] }
  0x19   :  { %154 = vmatpush.msra.mxu1 %v145_v7  ;;  %v140_v17 = vld [vmem:[#allocation7 + $0x40] sm:$0xff]  ;;  %v94_v18 = vld [vmem:[#allocation5 + $0x28] sm:$0xff]  ;;  %v139_v19 = vld [vmem:[#allocation7 + $0x38] sm:$0xff] }
  0x1a   :  { %112 = vmatpush.msra.mxu0 %v101_v3  ;;  %v93_v20 = vld [vmem:[#allocation5 + $0x20] sm:$0xff]  ;;  %v138_v21 = vld [vmem:[#allocation7 + $0x30] sm:$0xff]  ;;  %v92_v22 = vld [vmem:[#allocation5 + $0x18] sm:$0xff] }
  0x1b   :  { %155 = vmatpush.msra.mxu1 %v144_v9  ;;  %v137_v23 = vld [vmem:[#allocation7 + $0x28] sm:$0xff]  ;;  %v91_v24 = vld [vmem:[#allocation5 + $0x10] sm:$0xff]  ;;  %v136_v25 = vld [vmem:[#allocation7 + $0x20] sm:$0xff] }
  0x1c   :  { %113 = vmatpush.msra.mxu0 %v100_v5  ;;  %v90_v26 = vld [vmem:[#allocation5 + $0x8] sm:$0xff]  ;;  %v135_v27 = vld [vmem:[#allocation7 + $0x18] sm:$0xff]  ;;  %v89_v28 = vld [vmem:[#allocation5] sm:$0xff] }
  0x1d   :  { %156 = vmatpush.msra.mxu1 %v143_v11  ;;  %v88_v29 = vld [vmem:[#allocation2] sm:$0xff]  ;;  %v134_v30 = vld [vmem:[#allocation7 + $0x10] sm:$0xff]  ;;  %v133_v31 = vld [vmem:[#allocation7 + $0x8] sm:$0xff] }
  0x1e   :  { %114 = vmatpush.msra.mxu0 %v99_v8  ;;  %v132_v32 = vld [vmem:[#allocation7] sm:$0xff]  ;;  %v191_v33 = vld [vmem:[#allocation7 + $0xf8] sm:$0xff]  ;;  %v190_v34 = vld [vmem:[#allocation7 + $0xf0] sm:$0xff] }
  0x1f   :  { %157 = vmatpush.msra.mxu1 %v142_v13  ;;  %197 = vmatpush.msra.mxu2 %v191_v33  ;;  %v189_v35 = vld [vmem:[#allocation7 + $0xe8] sm:$0xff]  ;;  %v188_v36 = vld [vmem:[#allocation7 + $0xe0] sm:$0xff]  ;;  %v187_v37 = vld [vmem:[#allocation7 + $0xd8] sm:$0xff] }
  0x20   :  { %115 = vmatpush.msra.mxu0 %v98_v10  ;;  %v186_v38 = vld [vmem:[#allocation7 + $0xd0] sm:$0xff]  ;;  %v185_v39 = vld [vmem:[#allocation7 + $0xc8] sm:$0xff]  ;;  %v184_v40 = vld [vmem:[#allocation7 + $0xc0] sm:$0xff] }
  0x21   :  { %158 = vmatpush.msra.mxu1 %v141_v15  ;;  %198 = vmatpush.msra.mxu2 %v190_v34  ;;  %v183_v41 = vld [vmem:[#allocation7 + $0xb8] sm:$0xff]  ;;  %v182_v42 = vld [vmem:[#allocation7 + $0xb0] sm:$0xff]  ;;  %v181_v43 = vld [vmem:[#allocation7 + $0xa8] sm:$0xff] }
  0x22   :  { %116 = vmatpush.msra.mxu0 %v97_v12  ;;  %v180_v44 = vld [vmem:[#allocation7 + $0xa0] sm:$0xff]  ;;  %v179_v45 = vld [vmem:[#allocation7 + $0x98] sm:$0xff]  ;;  %v178_v51 = vld [vmem:[#allocation7 + $0x90] sm:$0xff] }
  0x23   :  { %159 = vmatpush.msra.mxu1 %v140_v17  ;;  %199 = vmatpush.msra.mxu2 %v189_v35  ;;  %v288_v46 = vld [vmem:[%s496_s2] ss:$0 sm:$0xff]  ;;  %v177_v52 = vld [vmem:[#allocation7 + $0x88] sm:$0xff]  ;;  %v176_v53 = vld [vmem:[#allocation7 + $0x80] sm:$0xff] }
  0x24   :  { %117 = vmatpush.msra.mxu0 %v96_v14  ;;  %v235_v54 = vld [vmem:[#allocation8 + $0x78] sm:$0xff]  ;;  %v234_v55 = vld [vmem:[#allocation8 + $0x70] sm:$0xff]  ;;  %v233_v56 = vld [vmem:[#allocation8 + $0x68] sm:$0xff] }
  0x25   :  { %160 = vmatpush.msra.mxu1 %v139_v19  ;;  %200 = vmatpush.msra.mxu2 %v188_v36  ;;  %v232_v57 = vld [vmem:[#allocation8 + $0x60] sm:$0xff]  ;;  %v231_v58 = vld [vmem:[#allocation8 + $0x58] sm:$0xff]  ;;  %v230_v59 = vld [vmem:[#allocation8 + $0x50] sm:$0xff] }
  0x26   :  { %118 = vmatpush.msra.mxu0 %v95_v16  ;;  %240 = vmatpush.msra.mxu3 %v235_v54  ;;  %v229_v60 = vld [vmem:[#allocation8 + $0x48] sm:$0xff]  ;;  %v228_v61 = vld [vmem:[#allocation8 + $0x40] sm:$0xff]  ;;  %v227_v62 = vld [vmem:[#allocation8 + $0x38] sm:$0xff] }
  0x27   :  { %161 = vmatpush.msra.mxu1 %v138_v21  ;;  %201 = vmatpush.msra.mxu2 %v187_v37  ;;  %v226_v63 = vld [vmem:[#allocation8 + $0x30] sm:$0xff]  ;;  %v225_v0 = vld [vmem:[#allocation8 + $0x28] sm:$0xff]  ;;  %v224_v1 = vld [vmem:[#allocation8 + $0x20] sm:$0xff] }
  0x28   :  { %119 = vmatpush.msra.mxu0 %v94_v18  ;;  %241 = vmatpush.msra.mxu3 %v234_v55  ;;  %v223_v2 = vld [vmem:[#allocation8 + $0x18] sm:$0xff]  ;;  %v222_v8 = vld [vmem:[#allocation8 + $0x10] sm:$0xff]  ;;  %v221_v9 = vld [vmem:[#allocation8 + $0x8] sm:$0xff] }
  0x29   :  { %162 = vmatpush.msra.mxu1 %v137_v23  ;;  %202 = vmatpush.msra.mxu2 %v186_v38  ;;  %v289_v3 = vld [vmem:[%s498_s4] ss:$0 sm:$0xff]  ;;  %v220_v10 = vld [vmem:[#allocation8] sm:$0xff]  ;;  %v290_v11 = vld [vmem:[%s498_s4 + $0x1] ss:$0 sm:$0xff] }
  0x2a   :  { %120 = vmatpush.msra.mxu0 %v93_v20  ;;  %242 = vmatpush.msra.mxu3 %v233_v56  ;;  %v291_v16 = vld [vmem:[%s500_s6] ss:$0 sm:$0xff] }
  0x2b   :  { %163 = vmatpush.msra.mxu1 %v136_v25  ;;  %203 = vmatpush.msra.mxu2 %v185_v39 }
  0x2c   :  { %121 = vmatpush.msra.mxu0 %v92_v22  ;;  %243 = vmatpush.msra.mxu3 %v232_v57 }
  0x2d   :  { %164 = vmatpush.msra.mxu1 %v135_v27  ;;  %204 = vmatpush.msra.mxu2 %v184_v40 }
  0x2e   :  { %122 = vmatpush.msra.mxu0 %v91_v24  ;;  %244 = vmatpush.msra.mxu3 %v231_v58 }
  0x2f   :  { %165 = vmatpush.msra.mxu1 %v134_v30  ;;  %205 = vmatpush.msra.mxu2 %v183_v41 }
  0x30   :  { %123 = vmatpush.msra.mxu0 %v90_v26  ;;  %245 = vmatpush.msra.mxu3 %v230_v59 }
  0x31   :  { %166 = vmatpush.msra.mxu1 %v133_v31  ;;  %206 = vmatpush.msra.mxu2 %v182_v42 }
  0x32   :  { %124 = vmatpush.msra.mxu0 %v89_v28  ;;  %246 = vmatpush.msra.mxu3 %v229_v60 }
  0x33   :  { %125 = vmatmul.f32.vlgmr.msra.gmra.mxu0 %v88_v29  ;;  %167 = vmatpush.msra.mxu1 %v132_v32 }
  0x34   :  { %207 = vmatpush.msra.mxu2 %v181_v43  ;;  %247 = vmatpush.msra.mxu3 %v228_v61 }
  0x36   :  { %208 = vmatpush.msra.mxu2 %v180_v44  ;;  %248 = vmatpush.msra.mxu3 %v227_v62 }
  0x38   :  { %209 = vmatpush.msra.mxu2 %v179_v45  ;;  %249 = vmatpush.msra.mxu3 %v226_v63 }
  0x3a   :  { %210 = vmatpush.msra.mxu2 %v178_v51  ;;  %250 = vmatpush.msra.mxu3 %v225_v0 }
  0x3c   :  { %211 = vmatpush.msra.mxu2 %v177_v52  ;;  %251 = vmatpush.msra.mxu3 %v224_v1 }
  0x3e   :  { %212 = vmatpush.msra.mxu2 %v176_v53  ;;  %252 = vmatpush.msra.mxu3 %v223_v2 }
  0x40   :  { %253 = vmatpush.msra.mxu3 %v222_v8 }
  0x42   :  { %254 = vmatpush.msra.mxu3 %v221_v9 }
  0x44   :  { %255 = vmatpush.msra.mxu3 %v220_v10 }
  0xb0   :  { %v126_v47 = vpop.f32.mrf.mxu0 }
  0xb1   :  { %v127_v48 = vadd.f32 %v288_v46, %v126_v47 }
  0xb3   :  { %vm129_vm0 = vcmp.gt.f32.partialorder %v127_v48, 0.0  ;;  %v130_v49 = vmul.f32 0.01, %v127_v48 }
  0xb5   :  { %v131_v50 = vsel %vm129_vm0, %v127_v48, %v130_v49 }
  0xb6   :  { %168 = vmatmul.f32.vlgmr.msra.gmra.mxu1 %v131_v50 }
 0x133   :  { %v169_v4 = vpop.f32.mrf.mxu1 }
 0x134   :  { %v170_v5 = vadd.f32 %v289_v3, %v169_v4 }
 0x136   :  { %vm172_vm1 = vcmp.gt.f32.partialorder %v170_v5, 0.0  ;;  %v173_v6 = vmul.f32 0.01, %v170_v5 }
 0x138   :  { %v174_v7 = vsel %vm172_vm1, %v170_v5, %v173_v6 }
 0x139   :  { %213 = vmatmul.f32.vlgmr.msra.gmra.mxu2 %v174_v7 }
 0x1bc   :  { %v214_v12 = vpop.f32.mrf.mxu2 }
 0x1bd   :  { %v215_v13 = vadd.f32 %v290_v11, %v214_v12 }
 0x1bf   :  { %vm217_vm2 = vcmp.gt.f32.partialorder %v215_v13, 0.0  ;;  %v218_v14 = vmul.f32 0.01, %v215_v13 }
 0x1c1   :  { %v219_v15 = vsel %vm217_vm2, %v215_v13, %v218_v14 }
 0x1c2   :  { %256 = vmatmul.f32.vlgmr.msra.gmra.mxu3 %v219_v15 }
 0x245   :  { %v257_v17 = vpop.f32.mrf.mxu3 }
 0x246   :  { %v258_v18 = vadd.f32 %v291_v16, %v257_v17 }
 0x248   :  { %260 = vst [vmem:[#allocation10] sm:$0xff] %v258_v18 }
 0x249   :  { %271 = dma.vmem_to_hbm [thread:$0]  %s267_s27, 128, %s269_s30, [#allocation4]  }
 0x24a   :  { %418 = dma.done.wait [#allocation4], 128  }
 0x24b   :  { %419 = vsyncadd [#allocation4], 4294967168 }
 0x24c   :  { %276 = vsyncpa [#allocation3], 1 }
 0x24d   :  { %277 = vsyncpa [#allocation6], 1 }
 0x24e   :  { %278 = vsyncpa [#allocation9], 1 }
 0x24f   :  { %279 = vsyncpa [#allocation4], 1 }

// kernel: tpu_custom_call.1
= control target key start
LH: loop header
LB: loop body
LE: loop exit
PB: predicated region body
PF: predicated region fallthrough
CT: control target
= control target key end

     0   :  { %12 = vsyncpa [#allocation3], 0  ;;  %s494_s0 = inlined_call_operand.hbm [shape: f32[8,128], index: 0, kind: input, shape index: {}]   ;;  %s495_s1 = inlined_call_operand.hbm [shape: f32[128,128], index: 1, kind: input, shape index: {}]   ;;  %s496_s2 = inlined_call_operand.vmem [shape: f32[1,128], index: 2, kind: input, shape index: {}]   ;;  %s497_s3 = inlined_call_operand.hbm [shape: f32[2,128,128], index: 3, kind: input, shape index: {}]   ;;  %s498_s4 = inlined_call_operand.vmem [shape: f32[2,1,128], index: 4, kind: input, shape index: {}]   ;;  %s499_s5 = inlined_call_operand.hbm [shape: f32[128,128], index: 5, kind: input, shape index: {}]   ;;  %s500_s6 = inlined_call_operand.vmem [shape: f32[1,128], index: 6, kind: input, shape index: {}]   ;;  %s501_s7 = inlined_call_operand.hbm [shape: f32[8,128], index: 7, kind: output, shape index: {}]  }
   0x1   :  { %13 = vsyncpa [#allocation6], 0 }
   0x2   :  { %14 = vsyncpa [#allocation9], 0  ;;  %s31_s26 = sshll.u32 %s495_s1, 4  ;;  %s32_s26 = int_to_ptr.hbm [resolvable:$true] %s31_s26 }
   0x3   :  { %15 = vsyncpa [#allocation4], 0  ;;  %s420_s27 = smov [#allocation5]   ;;  %s21_s8 = sshll.u32 %s494_s0, 4  ;;  %s22_s8 = int_to_ptr.hbm [resolvable:$true] %s21_s8 }
   0x4   :  { %s33_s28 = sshll.u32 %s420_s27, 4  ;;  %s421_s9 = smov 128   ;;  %s34_s28 = int_to_ptr.vmem [resolvable:$true] %s33_s28 }
   0x5   :  { %s422_s10 = smov 8   ;;  %s423_s11 = smov [#allocation2]  }
   0x6   :  { %39 = dma.hbm_to_vmem [thread:$0]  %s32_s26, 2048, %s34_s28, [#allocation6], %s421_s9, %s421_s9, %s422_s10  }
   0x7   :  { %s23_s12 = sshll.u32 %s423_s11, 4  ;;  %s46_s15 = sshll.u32 %s497_s3, 4  ;;  %s24_s12 = int_to_ptr.vmem [resolvable:$true] %s23_s12  ;;  %s47_s15 = int_to_ptr.hbm [resolvable:$true] %s46_s15 }
   0x8   :  { %26 = dma.hbm_to_vmem [thread:$0]  %s22_s8, 128, %s24_s12, [#allocation3]  }
   0x9   :  { %s61_s17 = sshll.u32 %s499_s5, 4  ;;  %s424_s18 = smov [#allocation7]   ;;  %s62_s17 = int_to_ptr.hbm [resolvable:$true] %s61_s17 }
   0xa   :  { %s48_s19 = sshll.u32 %s424_s18, 4  ;;  %s425_s0 = smov [#allocation8]   ;;  %s49_s19 = int_to_ptr.vmem [resolvable:$true] %s48_s19 }
   0xb   :  { %54 = dma.hbm_to_vmem [thread:$0]  %s47_s15, 4096, %s49_s19, [#allocation6], %s421_s9, %s421_s9, %s422_s10  }
   0xc   :  { %s63_s20 = sshll.u32 %s425_s0, 4  ;;  %s64_s20 = int_to_ptr.vmem [resolvable:$true] %s63_s20 }
   0xd   :  { %69 = dma.hbm_to_vmem [thread:$0]  %s62_s17, 2048, %s64_s20, [#allocation9], %s421_s9, %s421_s9, %s422_s10  }
   0xe   :  { %412 = dma.done.wait [#allocation3], 128  }
   0xf   :  { %413 = vsyncadd [#allocation3], 4294967168 }
  0x10   :  { %414 = dma.done.wait [#allocation6], 6144  }
  0x11   :  { %415 = vsyncadd [#allocation6], 4294961152 }
  0x12   :  { %416 = dma.done.wait [#allocation9], 2048  }
  0x13   :  { %417 = vsyncadd [#allocation9], 4294965248  ;;  %v104_v0 = vld [vmem:[#allocation5 + $0x78] sm:$0xff]  ;;  %v103_v1 = vld [vmem:[#allocation5 + $0x70] sm:$0xff]  ;;  %s426_s26 = smov [#allocation10]   ;;  %s268_s30 = sshll.u32 %s501_s7, 4  ;;  %s269_s30 = int_to_ptr.hbm [resolvable:$true] %s268_s30 }
  0x14   :  { %109 = vmatpush.msra.mxu0 %v104_v0  ;;  %v102_v2 = vld [vmem:[#allocation5 + $0x68] sm:$0xff]  ;;  %v101_v3 = vld [vmem:[#allocation5 + $0x60] sm:$0xff]  ;;  %v147_v4 = vld [vmem:[#allocation7 + $0x78] sm:$0xff]  ;;  %s266_s27 = sshll.u32 %s426_s26, 4  ;;  %s267_s27 = int_to_ptr.vmem [resolvable:$true] %s266_s27 }
  0x15   :  { %v100_v5 = vld [vmem:[#allocation5 + $0x58] sm:$0xff]  ;;  %152 = vmatpush.msra.mxu1 %v147_v4  ;;  %v146_v6 = vld [vmem:[#allocation7 + $0x70] sm:$0xff]  ;;  %v145_v7 = vld [vmem:[#allocation7 + $0x68] sm:$0xff] }
  0x16   :  { %110 = vmatpush.msra.mxu0 %v103_v1  ;;  %v99_v8 = vld [vmem:[#allocation5 + $0x50] sm:$0xff]  ;;  %v144_v9 = vld [vmem:[#allocation7 + $0x60] sm:$0xff]  ;;  %v98_v10 = vld [vmem:[#allocation5 + $0x48] sm:$0xff] }
  0x17   :  { %153 = vmatpush.msra.mxu1 %v146_v6  ;;  %v143_v11 = vld [vmem:[#allocation7 + $0x58] sm:$0xff]  ;;  %v97_v12 = vld [vmem:[#allocation5 + $0x40] sm:$0xff]  ;;  %v142_v13 = vld [vmem:[#allocation7 + $0x50] sm:$0xff] }
  0x18   :  { %111 = vmatpush.msra.mxu0 %v102_v2  ;;  %v96_v14 = vld [vmem:[#allocation5 + $0x38] sm:$0xff]  ;;  %v141_v15 = vld [vmem:[#allocation7 + $0x48] sm:$0xff]  ;;  %v95_v16 = vld [vmem:[#allocation5 + $0x30] sm:$0xff] }
  0x19   :  { %154 = vmatpush.msra.mxu1 %v145_v7  ;;  %v140_v17 = vld [vmem:[#allocation7 + $0x40] sm:$0xff]  ;;  %v94_v18 = vld [vmem:[#allocation5 + $0x28] sm:$0xff]  ;;  %v139_v19 = vld [vmem:[#allocation7 + $0x38] sm:$0xff] }
  0x1a   :  { %112 = vmatpush.msra.mxu0 %v101_v3  ;;  %v93_v20 = vld [vmem:[#allocation5 + $0x20] sm:$0xff]  ;;  %v138_v21 = vld [vmem:[#allocation7 + $0x30] sm:$0xff]  ;;  %v92_v22 = vld [vmem:[#allocation5 + $0x18] sm:$0xff] }
  0x1b   :  { %155 = vmatpush.msra.mxu1 %v144_v9  ;;  %v137_v23 = vld [vmem:[#allocation7 + $0x28] sm:$0xff]  ;;  %v91_v24 = vld [vmem:[#allocation5 + $0x10] sm:$0xff]  ;;  %v136_v25 = vld [vmem:[#allocation7 + $0x20] sm:$0xff] }
  0x1c   :  { %113 = vmatpush.msra.mxu0 %v100_v5  ;;  %v90_v26 = vld [vmem:[#allocation5 + $0x8] sm:$0xff]  ;;  %v135_v27 = vld [vmem:[#allocation7 + $0x18] sm:$0xff]  ;;  %v89_v28 = vld [vmem:[#allocation5] sm:$0xff] }
  0x1d   :  { %156 = vmatpush.msra.mxu1 %v143_v11  ;;  %v88_v29 = vld [vmem:[#allocation2] sm:$0xff]  ;;  %v134_v30 = vld [vmem:[#allocation7 + $0x10] sm:$0xff]  ;;  %v133_v31 = vld [vmem:[#allocation7 + $0x8] sm:$0xff] }
  0x1e   :  { %114 = vmatpush.msra.mxu0 %v99_v8  ;;  %v132_v32 = vld [vmem:[#allocation7] sm:$0xff]  ;;  %v191_v33 = vld [vmem:[#allocation7 + $0xf8] sm:$0xff]  ;;  %v190_v34 = vld [vmem:[#allocation7 + $0xf0] sm:$0xff] }
  0x1f   :  { %157 = vmatpush.msra.mxu1 %v142_v13  ;;  %197 = vmatpush.msra.mxu2 %v191_v33  ;;  %v189_v35 = vld [vmem:[#allocation7 + $0xe8] sm:$0xff]  ;;  %v188_v36 = vld [vmem:[#allocation7 + $0xe0] sm:$0xff]  ;;  %v187_v37 = vld [vmem:[#allocation7 + $0xd8] sm:$0xff] }
  0x20   :  { %115 = vmatpush.msra.mxu0 %v98_v10  ;;  %v186_v38 = vld [vmem:[#allocation7 + $0xd0] sm:$0xff]  ;;  %v185_v39 = vld [vmem:[#allocation7 + $0xc8] sm:$0xff]  ;;  %v184_v40 = vld [vmem:[#allocation7 + $0xc0] sm:$0xff] }
  0x21   :  { %158 = vmatpush.msra.mxu1 %v141_v15  ;;  %198 = vmatpush.msra.mxu2 %v190_v34  ;;  %v183_v41 = vld [vmem:[#allocation7 + $0xb8] sm:$0xff]  ;;  %v182_v42 = vld [vmem:[#allocation7 + $0xb0] sm:$0xff]  ;;  %v181_v43 = vld [vmem:[#allocation7 + $0xa8] sm:$0xff] }
  0x22   :  { %116 = vmatpush.msra.mxu0 %v97_v12  ;;  %v180_v44 = vld [vmem:[#allocation7 + $0xa0] sm:$0xff]  ;;  %v179_v45 = vld [vmem:[#allocation7 + $0x98] sm:$0xff]  ;;  %v178_v51 = vld [vmem:[#allocation7 + $0x90] sm:$0xff] }
  0x23   :  { %159 = vmatpush.msra.mxu1 %v140_v17  ;;  %199 = vmatpush.msra.mxu2 %v189_v35  ;;  %v288_v46 = vld [vmem:[%s496_s2] ss:$0 sm:$0xff]  ;;  %v177_v52 = vld [vmem:[#allocation7 + $0x88] sm:$0xff]  ;;  %v176_v53 = vld [vmem:[#allocation7 + $0x80] sm:$0xff] }
  0x24   :  { %117 = vmatpush.msra.mxu0 %v96_v14  ;;  %v235_v54 = vld [vmem:[#allocation8 + $0x78] sm:$0xff]  ;;  %v234_v55 = vld [vmem:[#allocation8 + $0x70] sm:$0xff]  ;;  %v233_v56 = vld [vmem:[#allocation8 + $0x68] sm:$0xff] }
  0x25   :  { %160 = vmatpush.msra.mxu1 %v139_v19  ;;  %200 = vmatpush.msra.mxu2 %v188_v36  ;;  %v232_v57 = vld [vmem:[#allocation8 + $0x60] sm:$0xff]  ;;  %v231_v58 = vld [vmem:[#allocation8 + $0x58] sm:$0xff]  ;;  %v230_v59 = vld [vmem:[#allocation8 + $0x50] sm:$0xff] }
  0x26   :  { %118 = vmatpush.msra.mxu0 %v95_v16  ;;  %240 = vmatpush.msra.mxu3 %v235_v54  ;;  %v229_v60 = vld [vmem:[#allocation8 + $0x48] sm:$0xff]  ;;  %v228_v61 = vld [vmem:[#allocation8 + $0x40] sm:$0xff]  ;;  %v227_v62 = vld [vmem:[#allocation8 + $0x38] sm:$0xff] }
  0x27   :  { %161 = vmatpush.msra.mxu1 %v138_v21  ;;  %201 = vmatpush.msra.mxu2 %v187_v37  ;;  %v226_v63 = vld [vmem:[#allocation8 + $0x30] sm:$0xff]  ;;  %v225_v0 = vld [vmem:[#allocation8 + $0x28] sm:$0xff]  ;;  %v224_v1 = vld [vmem:[#allocation8 + $0x20] sm:$0xff] }
  0x28   :  { %119 = vmatpush.msra.mxu0 %v94_v18  ;;  %241 = vmatpush.msra.mxu3 %v234_v55  ;;  %v223_v2 = vld [vmem:[#allocation8 + $0x18] sm:$0xff]  ;;  %v222_v8 = vld [vmem:[#allocation8 + $0x10] sm:$0xff]  ;;  %v221_v9 = vld [vmem:[#allocation8 + $0x8] sm:$0xff] }
  0x29   :  { %162 = vmatpush.msra.mxu1 %v137_v23  ;;  %202 = vmatpush.msra.mxu2 %v186_v38  ;;  %v289_v3 = vld [vmem:[%s498_s4] ss:$0 sm:$0xff]  ;;  %v220_v10 = vld [vmem:[#allocation8] sm:$0xff]  ;;  %v290_v11 = vld [vmem:[%s498_s4 + $0x1] ss:$0 sm:$0xff] }
  0x2a   :  { %120 = vmatpush.msra.mxu0 %v93_v20  ;;  %242 = vmatpush.msra.mxu3 %v233_v56  ;;  %v291_v16 = vld [vmem:[%s500_s6] ss:$0 sm:$0xff] }
  0x2b   :  { %163 = vmatpush.msra.mxu1 %v136_v25  ;;  %203 = vmatpush.msra.mxu2 %v185_v39 }
  0x2c   :  { %121 = vmatpush.msra.mxu0 %v92_v22  ;;  %243 = vmatpush.msra.mxu3 %v232_v57 }
  0x2d   :  { %164 = vmatpush.msra.mxu1 %v135_v27  ;;  %204 = vmatpush.msra.mxu2 %v184_v40 }
  0x2e   :  { %122 = vmatpush.msra.mxu0 %v91_v24  ;;  %244 = vmatpush.msra.mxu3 %v231_v58 }
  0x2f   :  { %165 = vmatpush.msra.mxu1 %v134_v30  ;;  %205 = vmatpush.msra.mxu2 %v183_v41 }
  0x30   :  { %123 = vmatpush.msra.mxu0 %v90_v26  ;;  %245 = vmatpush.msra.mxu3 %v230_v59 }
  0x31   :  { %166 = vmatpush.msra.mxu1 %v133_v31  ;;  %206 = vmatpush.msra.mxu2 %v182_v42 }
  0x32   :  { %124 = vmatpush.msra.mxu0 %v89_v28  ;;  %246 = vmatpush.msra.mxu3 %v229_v60 }
  0x33   :  { %125 = vmatmul.f32.vlgmr.msra.gmra.mxu0 %v88_v29  ;;  %167 = vmatpush.msra.mxu1 %v132_v32 }
  0x34   :  { %207 = vmatpush.msra.mxu2 %v181_v43  ;;  %247 = vmatpush.msra.mxu3 %v228_v61 }
  0x36   :  { %208 = vmatpush.msra.mxu2 %v180_v44  ;;  %248 = vmatpush.msra.mxu3 %v227_v62 }
  0x38   :  { %209 = vmatpush.msra.mxu2 %v179_v45  ;;  %249 = vmatpush.msra.mxu3 %v226_v63 }
  0x3a   :  { %210 = vmatpush.msra.mxu2 %v178_v51  ;;  %250 = vmatpush.msra.mxu3 %v225_v0 }
  0x3c   :  { %211 = vmatpush.msra.mxu2 %v177_v52  ;;  %251 = vmatpush.msra.mxu3 %v224_v1 }
  0x3e   :  { %212 = vmatpush.msra.mxu2 %v176_v53  ;;  %252 = vmatpush.msra.mxu3 %v223_v2 }
  0x40   :  { %253 = vmatpush.msra.mxu3 %v222_v8 }
  0x42   :  { %254 = vmatpush.msra.mxu3 %v221_v9 }
  0x44   :  { %255 = vmatpush.msra.mxu3 %v220_v10 }
  0xb0   :  { %v126_v47 = vpop.f32.mrf.mxu0 }
  0xb1   :  { %v127_v48 = vadd.f32 %v288_v46, %v126_v47 }
  0xb3   :  { %vm129_vm0 = vcmp.gt.f32.partialorder %v127_v48, 0.0  ;;  %v130_v49 = vmul.f32 0.01, %v127_v48 }
  0xb5   :  { %v131_v50 = vsel %vm129_vm0, %v127_v48, %v130_v49 }
  0xb6   :  { %168 = vmatmul.f32.vlgmr.msra.gmra.mxu1 %v131_v50 }
 0x133   :  { %v169_v4 = vpop.f32.mrf.mxu1 }
 0x134   :  { %v170_v5 = vadd.f32 %v289_v3, %v169_v4 }
 0x136   :  { %vm172_vm1 = vcmp.gt.f32.partialorder %v170_v5, 0.0  ;;  %v173_v6 = vmul.f32 0.01, %v170_v5 }
 0x138   :  { %v174_v7 = vsel %vm172_vm1, %v170_v5, %v173_v6 }
 0x139   :  { %213 = vmatmul.f32.vlgmr.msra.gmra.mxu2 %v174_v7 }
 0x1bc   :  { %v214_v12 = vpop.f32.mrf.mxu2 }
 0x1bd   :  { %v215_v13 = vadd.f32 %v290_v11, %v214_v12 }
 0x1bf   :  { %vm217_vm2 = vcmp.gt.f32.partialorder %v215_v13, 0.0  ;;  %v218_v14 = vmul.f32 0.01, %v215_v13 }
 0x1c1   :  { %v219_v15 = vsel %vm217_vm2, %v215_v13, %v218_v14 }
 0x1c2   :  { %256 = vmatmul.f32.vlgmr.msra.gmra.mxu3 %v219_v15 }
 0x245   :  { %v257_v17 = vpop.f32.mrf.mxu3 }
 0x246   :  { %v258_v18 = vadd.f32 %v291_v16, %v257_v17 }
 0x248   :  { %260 = vst [vmem:[#allocation10] sm:$0xff] %v258_v18 }
 0x249   :  { %271 = dma.vmem_to_hbm [thread:$0]  %s267_s27, 128, %s269_s30, [#allocation4]  }
 0x24a   :  { %418 = dma.done.wait [#allocation4], 128  }
 0x24b   :  { %419 = vsyncadd [#allocation4], 4294967168 }
 0x24c   :  { %276 = vsyncpa [#allocation3], 1 }
 0x24d   :  { %277 = vsyncpa [#allocation6], 1 }
 0x24e   :  { %278 = vsyncpa [#allocation9], 1 }
 0x24f   :  { %279 = vsyncpa [#allocation4], 1 }

</bundles_post_ra>
